<compile_context>
chip_gen: v7x
topology: tpu7x:2x2x1
jax: 0.10.0
libtpu: 0.0.40
codegen_flags: <defaults>
</compile_context>

<pallas_src>
import jax
import jax.numpy as jnp
from jax import lax
from jax.experimental import pallas as pl
from jax.experimental.pallas import tpu as pltpu


def _round_up(x, m):
    return (x + m - 1) // m * m


def _vmem_capacity_bytes():
    try:
        return int(pltpu.get_tpu_info().vmem_capacity_bytes)
    except Exception:
        return 64 * 1024 * 1024  # conservative (v7x per-TC VMEM)


def _block_bytes(rows, cols, itemsize=4):
    # VMEM blocks are (8,128)-tiled: rows pad to 8, lanes pad to 128.
    return _round_up(max(rows, 1), 8) * _round_up(max(cols, 1), 128) * itemsize


def _pick_tile_b(batch, requested):
    b8 = _round_up(max(batch, 1), 8)
    t = min(_round_up(requested, 8), b8)
    # v7x megacore: make sure the batch grid has >= 2 steps when the batch is
    # big enough to split (single-step grids leave one TensorCore idle).
    if b8 >= 2 * 128 and t >= b8:
        t = _round_up((b8 + 1) // 2, 8)
    return max(t, 8)


def qnet_head_kernel(bo_ref, act_ref, w1a_ref, w1b_ref, b1_ref,
                     w2_ref, b2_ref, w3t_ref, b3_ref, out_ref):
    # fc1: split dot over the implicitly-concatenated input (no wrapper concat).
    h1 = jnp.dot(bo_ref[...], w1a_ref[...], preferred_element_type=jnp.float32)
    h1 = h1 + jnp.dot(act_ref[...], w1b_ref[...],
                      preferred_element_type=jnp.float32)
    h1 = jnp.maximum(h1 + b1_ref[...], 0.0)                    # relu(fc1)

    # fc2
    h2 = jnp.dot(h1, w2_ref[...], preferred_element_type=jnp.float32)
    h2 = jnp.maximum(h2 + b2_ref[...], 0.0)                    # relu(fc2)

    # fc3, lane-dense: (8,16) x (tile_b,16)^T -> (8, tile_b).  The batch index
    # comes out on the lane axis (row 0 is the real fc3 row, rows 1..7 are
    # zero weights), so the store is wide/unmasked and the writeback DMA is
    # dense and contiguous.
    r8 = lax.dot_general(w3t_ref[...], h2,
                         dimension_numbers=(((1,), (1,)), ((), ())),
                         preferred_element_type=jnp.float32)
    out_ref[...] = (r8 + b3_ref[...]).astype(out_ref.dtype)


def qnet_head_forward(backbone_output, actions, params, *, tile_b=4096):
    """params: w1 [in,256], b1 [256], w2 [256,16], b2 [16], w3 [16,1], b3 [1]
    (weights in [in,out] layout, y = x @ W + b)."""
    B, bo_dim = backbone_output.shape
    act_dim = actions.shape[1]
    n1 = params["w1"].shape[1]          # 256
    n2 = params["w2"].shape[1]          # 16

    tile_b = _pick_tile_b(B, tile_b)
    b_pad = _round_up(B, tile_b)
    num_steps = b_pad // tile_b

    # ---- inputs: f32, zero-padded on batch only (no concat / lane pad) ------
    bo = backbone_output.astype(jnp.float32)
    act = actions.astype(jnp.float32)
    if b_pad > B:
        bo = jnp.pad(bo, ((0, b_pad - B), (0, 0)))
        act = jnp.pad(act, ((0, b_pad - B), (0, 0)))

    # ---- params (tiny, VMEM-resident across all grid steps) -----------------
    w1 = params["w1"].astype(jnp.float32)
    w1a = w1[:bo_dim]                                   # (bo_dim, 256)
    w1b = w1[bo_dim:]                                   # (act_dim, 256)
    b1 = params["b1"].reshape(1, n1).astype(jnp.float32)
    w2 = params["w2"].astype(jnp.float32)               # (256, 16)
    b2 = params["b2"].reshape(1, n2).astype(jnp.float32)
    # fc3 weights transposed and padded to 8 rows (row 0 real, rows 1..7 zero)
    # so the MXU emits a lane-dense (8, tile_b) result.
    w3t = jnp.zeros((8, n2), jnp.float32).at[0].set(
        params["w3"].reshape(n2).astype(jnp.float32))
    b3 = params["b3"].reshape(1, 1).astype(jnp.float32)

    const = lambda i: (0, 0)
    in_specs = [
        pl.BlockSpec((tile_b, bo_dim), lambda i: (i, 0)),   # backbone output
        pl.BlockSpec((tile_b, act_dim), lambda i: (i, 0)),  # actions
        pl.BlockSpec((bo_dim, n1), const),                  # w1a
        pl.BlockSpec((act_dim, n1), const),                 # w1b
        pl.BlockSpec((1, n1), const),                       # b1
        pl.BlockSpec((n1, n2), const),                      # w2
        pl.BlockSpec((1, n2), const),                       # b2
        pl.BlockSpec((8, n2), const),                       # w3t (8 rows)
        pl.BlockSpec((1, 1), const),                        # b3
    ]
    out_specs = pl.BlockSpec((8, tile_b), lambda i: (i, 0))
    out_shape = jax.ShapeDtypeStruct((num_steps * 8, tile_b), jnp.float32)

    # ---- VMEM budget (chip-aware cap: v7x has 64 MiB per TC) ----------------
    per_step = (2 * _block_bytes(tile_b, bo_dim)       # input blocks, 2 bufs
                + 2 * _block_bytes(tile_b, act_dim)
                + 2 * _block_bytes(8, tile_b)          # output blocks, 2 bufs
                + _block_bytes(tile_b, n1)             # h1 temp
                + _block_bytes(tile_b, n2)             # h2 temp
                + _block_bytes(8, tile_b)              # r8 temp
                + _block_bytes(bo_dim, n1) + _block_bytes(act_dim, n1)
                + _block_bytes(n1, n2) + _block_bytes(8, n2)
                + _block_bytes(1, n1) + _block_bytes(1, n2) + _block_bytes(1, 1))
    vmem_cap = _vmem_capacity_bytes()
    vmem_limit = max(32 * 1024 * 1024, per_step * 3)
    vmem_limit = min(vmem_limit, (vmem_cap * 3) // 4)

    in1 = bo_dim + act_dim
    flops = 2 * B * (in1 * n1 + n1 * n2 + n2 * 8)
    bytes_accessed = (b_pad * (bo_dim + act_dim) * 4           # inputs
                      + num_steps * 8 * tile_b * 4             # packed output
                      + (in1 * n1 + n1 * n2 + 8 * n2 + n1 + n2 + 1) * 4)

    out = pl.pallas_call(
        qnet_head_kernel,
        out_shape=out_shape,
        grid=(num_steps,),
        in_specs=in_specs,
        out_specs=out_specs,
        compiler_params=pltpu.CompilerParams(
            dimension_semantics=("parallel",),
            vmem_limit_bytes=vmem_limit),
        cost_estimate=pl.CostEstimate(flops=flops, transcendentals=0,
                                      bytes_accessed=bytes_accessed),
    )(bo, act, w1a, w1b, b1, w2, b2, w3t, b3)

    # Row 0 of every (8, tile_b) group holds the real fc3 output for that
    # batch tile; the strided slice reads only ~4 B/row.
    return out.reshape(num_steps, 8, tile_b)[:, 0, :].reshape(-1, 1)[:B]


def init_params(key, backbone_output_size, action_size):
    """nn.Linear-style U(-1/sqrt(fan_in), +1/sqrt(fan_in)) init, [in,out] layout."""
    in1 = backbone_output_size + action_size
    dims = [(in1, 256), (256, 16), (16, 1)]
    params = {}
    for i, (fin, fout) in enumerate(dims, start=1):
        key, kw, kb = jax.random.split(key, 3)
        bound = 1.0 / jnp.sqrt(jnp.float32(fin))
        params[f"w{i}"] = jax.random.uniform(
            kw, (fin, fout), jnp.float32, minval=-bound, maxval=bound)
        params[f"b{i}"] = jax.random.uniform(
            kb, (fout,), jnp.float32, minval=-bound, maxval=bound)
    return params


def reference_forward(backbone_output, actions, params):
    x = jnp.concatenate([backbone_output, actions], axis=1)
    x = jnp.maximum(x @ params["w1"] + params["b1"], 0.0)
    x = jnp.maximum(x @ params["w2"] + params["b2"], 0.0)
    return x @ params["w3"] + params["b3"]


if __name__ == "__main__":
    backbone_output_size = 32
    action_size = 8
    batch = 4

    key = jax.random.PRNGKey(0)
    kp, kx, ka = jax.random.split(key, 3)
    params = init_params(kp, backbone_output_size, action_size)

    backbone_output = jax.random.normal(
        kx, (batch, backbone_output_size), jnp.float32)
    actions = jax.random.normal(ka, (batch, action_size), jnp.float32)

    reward = qnet_head_forward(backbone_output, actions, params)
    reward = jax.block_until_ready(reward)

    ref = reference_forward(backbone_output, actions, params)
    assert reward.shape == (batch, 1)
    assert jnp.allclose(reward, ref, atol=2e-2, rtol=2e-2), (
        f"mismatch: {reward} vs {ref}")

    print("KERNEL_OK")
</pallas_src>

<mosaic_0001>
module attributes {stable_mosaic.version = 11 : i64} {
  func.func @qnet_head_kernel(%arg0: i32, %arg1: memref<8x32xf32, #tpu.memory_space<vmem>>, %arg2: memref<8x8xf32, #tpu.memory_space<vmem>>, %arg3: memref<32x256xf32, #tpu.memory_space<vmem>>, %arg4: memref<8x256xf32, #tpu.memory_space<vmem>>, %arg5: memref<1x256xf32, #tpu.memory_space<vmem>>, %arg6: memref<256x16xf32, #tpu.memory_space<vmem>>, %arg7: memref<1x16xf32, #tpu.memory_space<vmem>>, %arg8: memref<8x16xf32, #tpu.memory_space<vmem>>, %arg9: memref<1x1xf32, #tpu.memory_space<vmem>>, %arg10: memref<8x8xf32, #tpu.memory_space<vmem>>) attributes {dimension_semantics = [#tpu.dimension_semantics<parallel>], iteration_bounds = array<i64: 1>, scalar_prefetch = 0 : i64, scratch_operands = 0 : i64, tpu.core_type = #tpu.core_type<tc>, window_params = [{transform_indices = @transform_0, window_bounds = array<i64: 8, 32>}, {transform_indices = @transform_1, window_bounds = array<i64: 8, 8>}, {pipeline_mode = #tpu.pipeline_mode<synchronous>, transform_indices = @transform_2, window_bounds = array<i64: 32, 256>}, {pipeline_mode = #tpu.pipeline_mode<synchronous>, transform_indices = @transform_3, window_bounds = array<i64: 8, 256>}, {pipeline_mode = #tpu.pipeline_mode<synchronous>, transform_indices = @transform_4, window_bounds = array<i64: 1, 256>}, {pipeline_mode = #tpu.pipeline_mode<synchronous>, transform_indices = @transform_5, window_bounds = array<i64: 256, 16>}, {pipeline_mode = #tpu.pipeline_mode<synchronous>, transform_indices = @transform_6, window_bounds = array<i64: 1, 16>}, {pipeline_mode = #tpu.pipeline_mode<synchronous>, transform_indices = @transform_7, window_bounds = array<i64: 8, 16>}, {pipeline_mode = #tpu.pipeline_mode<synchronous>, transform_indices = @transform_8, window_bounds = array<i64: 1, 1>}, {transform_indices = @transform_9, window_bounds = array<i64: 8, 8>}]} {
    %c0 = arith.constant 0 : index
    %c0_0 = arith.constant 0 : index
    %0 = vector.load %arg1[%c0, %c0_0] : memref<8x32xf32, #tpu.memory_space<vmem>>, vector<8x32xf32>
    %c0_1 = arith.constant 0 : index
    %c0_2 = arith.constant 0 : index
    %1 = vector.load %arg3[%c0_1, %c0_2] : memref<32x256xf32, #tpu.memory_space<vmem>>, vector<32x256xf32>
    %cst = arith.constant dense<0.000000e+00> : vector<8x256xf32>
    %2 = tpu.matmul %0, %1, %cst {dimension_numbers = #tpu.dot_dimension_numbers<[1], [0], [0], [1], [0, 0, 1, 1], [], []>} : vector<8x32xf32>, vector<32x256xf32>, vector<8x256xf32> -> vector<8x256xf32>
    %c0_3 = arith.constant 0 : index
    %c0_4 = arith.constant 0 : index
    %3 = vector.load %arg2[%c0_3, %c0_4] : memref<8x8xf32, #tpu.memory_space<vmem>>, vector<8x8xf32>
    %c0_5 = arith.constant 0 : index
    %c0_6 = arith.constant 0 : index
    %4 = vector.load %arg4[%c0_5, %c0_6] : memref<8x256xf32, #tpu.memory_space<vmem>>, vector<8x256xf32>
    %cst_7 = arith.constant dense<0.000000e+00> : vector<8x256xf32>
    %5 = tpu.matmul %3, %4, %cst_7 {dimension_numbers = #tpu.dot_dimension_numbers<[1], [0], [0], [1], [0, 0, 1, 1], [], []>} : vector<8x8xf32>, vector<8x256xf32>, vector<8x256xf32> -> vector<8x256xf32>
    %6 = arith.addf %2, %5 : vector<8x256xf32>
    %c0_8 = arith.constant 0 : index
    %c0_9 = arith.constant 0 : index
    %7 = vector.load %arg5[%c0_8, %c0_9] : memref<1x256xf32, #tpu.memory_space<vmem>>, vector<1x256xf32>
    %8 = vector.broadcast %7 : vector<1x256xf32> to vector<8x256xf32>
    %9 = arith.addf %6, %8 : vector<8x256xf32>
    %cst_10 = arith.constant 0.000000e+00 : f32
    %10 = vector.broadcast %cst_10 : f32 to vector<8x256xf32>
    %11 = arith.maximumf %9, %10 : vector<8x256xf32>
    %c0_11 = arith.constant 0 : index
    %c0_12 = arith.constant 0 : index
    %12 = vector.load %arg6[%c0_11, %c0_12] : memref<256x16xf32, #tpu.memory_space<vmem>>, vector<256x16xf32>
    %cst_13 = arith.constant dense<0.000000e+00> : vector<8x16xf32>
    %13 = tpu.matmul %11, %12, %cst_13 {dimension_numbers = #tpu.dot_dimension_numbers<[1], [0], [0], [1], [0, 0, 1, 1], [], []>} : vector<8x256xf32>, vector<256x16xf32>, vector<8x16xf32> -> vector<8x16xf32>
    %c0_14 = arith.constant 0 : index
    %c0_15 = arith.constant 0 : index
    %14 = vector.load %arg7[%c0_14, %c0_15] : memref<1x16xf32, #tpu.memory_space<vmem>>, vector<1x16xf32>
    %15 = vector.broadcast %14 : vector<1x16xf32> to vector<8x16xf32>
    %16 = arith.addf %13, %15 : vector<8x16xf32>
    %cst_16 = arith.constant 0.000000e+00 : f32
    %17 = vector.broadcast %cst_16 : f32 to vector<8x16xf32>
    %18 = arith.maximumf %16, %17 : vector<8x16xf32>
    %c0_17 = arith.constant 0 : index
    %c0_18 = arith.constant 0 : index
    %19 = vector.load %arg8[%c0_17, %c0_18] : memref<8x16xf32, #tpu.memory_space<vmem>>, vector<8x16xf32>
    %cst_19 = arith.constant dense<0.000000e+00> : vector<8x8xf32>
    %20 = tpu.matmul %19, %18, %cst_19 {dimension_numbers = #tpu.dot_dimension_numbers<[1], [1], [0], [0], [0, 0, 1, 0], [], []>} : vector<8x16xf32>, vector<8x16xf32>, vector<8x8xf32> -> vector<8x8xf32>
    %c0_20 = arith.constant 0 : index
    %c0_21 = arith.constant 0 : index
    %21 = vector.load %arg9[%c0_20, %c0_21] : memref<1x1xf32, #tpu.memory_space<vmem>>, vector<1x1xf32>
    %22 = vector.broadcast %21 : vector<1x1xf32> to vector<8x8xf32>
    %23 = arith.addf %20, %22 : vector<8x8xf32>
    %c0_22 = arith.constant 0 : index
    %c0_23 = arith.constant 0 : index
    %24 = vector.load %arg10[%c0_22, %c0_23] : memref<8x8xf32, #tpu.memory_space<vmem>>, vector<8x8xf32>
    tpu.vector_store %arg10[%c0_22, %c0_23], %23 {strides = array<i32>} : memref<8x8xf32, #tpu.memory_space<vmem>>, vector<8x8xf32>,
    return
  }
  func.func @transform_0(%arg0: i32) -> (i32, i32) {
    %c0_i32 = arith.constant 0 : i32
    %c0_i32_0 = arith.constant 0 : i32
    return %arg0, %c0_i32 : i32, i32
  }
  func.func @transform_1(%arg0: i32) -> (i32, i32) {
    %c0_i32 = arith.constant 0 : i32
    %c0_i32_0 = arith.constant 0 : i32
    return %arg0, %c0_i32 : i32, i32
  }
  func.func @transform_2(%arg0: i32) -> (i32, i32) {
    %c0_i32 = arith.constant 0 : i32
    %c0_i32_0 = arith.constant 0 : i32
    %c0_i32_1 = arith.constant 0 : i32
    return %c0_i32, %c0_i32_0 : i32, i32
  }
  func.func @transform_3(%arg0: i32) -> (i32, i32) {
    %c0_i32 = arith.constant 0 : i32
    %c0_i32_0 = arith.constant 0 : i32
    %c0_i32_1 = arith.constant 0 : i32
    return %c0_i32, %c0_i32_0 : i32, i32
  }
  func.func @transform_4(%arg0: i32) -> (i32, i32) {
    %c0_i32 = arith.constant 0 : i32
    %c0_i32_0 = arith.constant 0 : i32
    %c0_i32_1 = arith.constant 0 : i32
    return %c0_i32, %c0_i32_0 : i32, i32
  }
  func.func @transform_5(%arg0: i32) -> (i32, i32) {
    %c0_i32 = arith.constant 0 : i32
    %c0_i32_0 = arith.constant 0 : i32
    %c0_i32_1 = arith.constant 0 : i32
    return %c0_i32, %c0_i32_0 : i32, i32
  }
  func.func @transform_6(%arg0: i32) -> (i32, i32) {
    %c0_i32 = arith.constant 0 : i32
    %c0_i32_0 = arith.constant 0 : i32
    %c0_i32_1 = arith.constant 0 : i32
    return %c0_i32, %c0_i32_0 : i32, i32
  }
  func.func @transform_7(%arg0: i32) -> (i32, i32) {
    %c0_i32 = arith.constant 0 : i32
    %c0_i32_0 = arith.constant 0 : i32
    %c0_i32_1 = arith.constant 0 : i32
    return %c0_i32, %c0_i32_0 : i32, i32
  }
  func.func @transform_8(%arg0: i32) -> (i32, i32) {
    %c0_i32 = arith.constant 0 : i32
    %c0_i32_0 = arith.constant 0 : i32
    %c0_i32_1 = arith.constant 0 : i32
    return %c0_i32, %c0_i32_0 : i32, i32
  }
  func.func @transform_9(%arg0: i32) -> (i32, i32) {
    %c0_i32 = arith.constant 0 : i32
    %c0_i32_0 = arith.constant 0 : i32
    return %arg0, %c0_i32 : i32, i32
  }
}

</mosaic_0001>

<bundles_post_ra>
// kernel: tpu_custom_call.1
= control target key start
LH: loop header
LB: loop body
LE: loop exit
PB: predicated region body
PF: predicated region fallthrough
CT: control target
= control target key end

     0   :  { %s761_s0 = inlined_call_operand.vmem [shape: f32[8,32], index: 0, kind: input, shape index: {}]   ;;  %s762_s1 = inlined_call_operand.vmem [shape: f32[8,8], index: 1, kind: input, shape index: {}]   ;;  %s763_s2 = inlined_call_operand.vmem [shape: f32[32,256], index: 2, kind: input, shape index: {}]   ;;  %s764_s3 = inlined_call_operand.vmem [shape: f32[8,256], index: 3, kind: input, shape index: {}]   ;;  %s765_s4 = inlined_call_operand.vmem [shape: f32[1,256], index: 4, kind: input, shape index: {}]   ;;  %s766_s5 = inlined_call_operand.vmem [shape: f32[256,16], index: 5, kind: input, shape index: {}]   ;;  %s767_s6 = inlined_call_operand.vmem [shape: f32[1,16], index: 6, kind: input, shape index: {}]   ;;  %s768_s7 = inlined_call_operand.vmem [shape: f32[8,16], index: 7, kind: input, shape index: {}]   ;;  %s769_s8 = inlined_call_operand.<no memory space> [shape: f32[1,1], index: 8, kind: input, shape index: {}]   ;;  %s770_s9 = inlined_call_operand.hbm [shape: f32[8,8], index: 9, kind: output, shape index: {}]  }
   0x1   :  { %v14_v0 = vstv %s769_s8 }
   0x2   :  { %15 = vst [vmem:[#allocation2] sm:$0x1] %v14_v0 }
   0x3   :  { %v46_v1 = vld [vmem:[%s764_s3 + $0x8] sm:$0xff]  ;;  %v45_v2 = vld [vmem:[%s764_s3] sm:$0xff]  ;;  %vm47_vm0 = vcmask 64512   ;;  %v545_v4 = vmov 0.0   ;;  %v39_v6 = vld [vmem:[%s763_s2 + $0x18] sm:$0xff]  ;;  %vm122_vm1 = vcmask 261120  }
   0x4   :  { %v44_v3 = vld [vmem:[%s762_s1] sm:$0xff]  ;;  %51 = vmatprep.subr.mxu0 %v46_v1  ;;  %115 = vmatprep.mubr.f32.mxu0 %v545_v4  ;;  %v37_v5 = vld [vmem:[%s763_s2 + $0x8] sm:$0xff]  ;;  %v38_v9 = vld [vmem:[%s763_s2 + $0x10] sm:$0xff] }
   0x5   :  { %v36_v7 = vld [vmem:[%s763_s2] sm:$0xff]  ;;  %52 = vmatpush1.msra.mxu0 %v45_v2  ;;  %v474_v8 = vpack.c.bf16 %v39_v6, %v37_v5  ;;  %v41_v10 = vld [vmem:[%s763_s2 + $0x28] sm:$0xff]  ;;  %v43_v11 = vld [vmem:[%s763_s2 + $0x38] sm:$0xff] }
   0x6   :  { %426 = vmatmul.mubr.msk.f32.vlgmr.msra.gmra.mrb[0].mxu0 %vm47_vm0, %v44_v3  ;;  %v476_v12 = vpack.c.bf16 %v38_v9, %v36_v7  ;;  %v478_v13 = vpack.c.bf16 %v43_v11, %v41_v10  ;;  %v40_v14 = vld [vmem:[%s763_s2 + $0x20] sm:$0xff]  ;;  %v42_v15 = vld [vmem:[%s763_s2 + $0x30] sm:$0xff]  ;;  %v230_v17 = vld [vmem:[%s766_s5 + $0x88] sm:$0xff] }
   0x7   :  { %475 = vmatprep.subr.bf16.mxu0 %v474_v8  ;;  %190 = vmatprep.mubr.f32.mxu0 %v545_v4  ;;  %v229_v16 = vld [vmem:[%s766_s5 + $0x80] sm:$0xff]  ;;  %v480_v19 = vpack.c.bf16 %v42_v15, %v40_v14  ;;  %v214_v21 = vld [vmem:[%s766_s5 + $0x8] sm:$0xff]  ;;  %v231_v22 = vld [vmem:[%s766_s5 + $0x90] sm:$0xff] }
   0x8   :  { %v213_v18 = vld [vmem:[%s766_s5] sm:$0xff]  ;;  %477 = vmatpush1.bf16.msra.mxu0 %v476_v12  ;;  %v482_v20 = vpack.c.bf16 %v230_v17, %v229_v16  ;;  %v232_v23 = vld [vmem:[%s766_s5 + $0x98] sm:$0xff]  ;;  %v215_v26 = vld [vmem:[%s766_s5 + $0x10] sm:$0xff] }
   0x9   :  { %479 = vmatprep.subr.bf16.mxu0 %v478_v13  ;;  %v484_v24 = vpack.c.bf16 %v214_v21, %v213_v18  ;;  %v486_v25 = vpack.c.bf16 %v232_v23, %v231_v22  ;;  %v216_v27 = vld [vmem:[%s766_s5 + $0x18] sm:$0xff]  ;;  %v233_v28 = vld [vmem:[%s766_s5 + $0xa0] sm:$0xff]  ;;  %v234_v29 = vld [vmem:[%s766_s5 + $0xa8] sm:$0xff] }
   0xa   :  { %483 = vmatprep.subr.bf16.mxu1 %v482_v20  ;;  %v488_v30 = vpack.c.bf16 %v216_v27, %v215_v26  ;;  %v35_v31 = vld [vmem:[%s761_s0] sm:$0xff]  ;;  %v490_v32 = vpack.c.bf16 %v234_v29, %v233_v28  ;;  %v218_v34 = vld [vmem:[%s766_s5 + $0x28] sm:$0xff]  ;;  %v235_v35 = vld [vmem:[%s766_s5 + $0xb0] sm:$0xff] }
   0xb   :  { %485 = vmatpush3.bf16.msra.mxu1 %v484_v24  ;;  %v217_v33 = vld [vmem:[%s766_s5 + $0x20] sm:$0xff]  ;;  %v236_v36 = vld [vmem:[%s766_s5 + $0xb8] sm:$0xff] }
   0xc   :  { %481 = vmatpush1.bf16.msra.mxu0 %v480_v19  ;;  %487 = vmatprep.subr.bf16.mxu1 %v486_v25  ;;  %v492_v37 = vpack.c.bf16 %v218_v34, %v217_v33 }
   0xd   :  { %469 = vmatprep.subr.mxu0 %v545_v4 }
   0xf   :  { %427 = vmatmul.mubr.msk.f32.vlgmr.msra.gmra.mrb[0].mxu0 %vm122_vm1, %v35_v31  ;;  %489 = vmatpush3.bf16.msra.mxu1 %v488_v30 }
  0x10   :  { %16 = vsyncpa [#allocation4], 0  ;;  %491 = vmatprep.subr.bf16.mxu1 %v490_v32  ;;  %v494_v38 = vpack.c.bf16 %v236_v36, %v235_v35  ;;  %v219_v39 = vld [vmem:[%s766_s5 + $0x30] sm:$0xff]  ;;  %v220_v40 = vld [vmem:[%s766_s5 + $0x38] sm:$0xff]  ;;  %v199_v2 = vlaneseq  ;;  %vm546_vm2 = vmmov 0   ;;  %v547_v17 = vmov 0  }
  0x11   :  { %v237_v41 = vld [vmem:[%s766_s5 + $0xc0] sm:$0xff]  ;;  %v238_v42 = vld [vmem:[%s766_s5 + $0xc8] sm:$0xff]  ;;  %v496_v43 = vpack.c.bf16 %v220_v40, %v219_v39  ;;  %v239_v47 = vld [vmem:[%s766_s5 + $0xd0] sm:$0xff]  ;;  %471 = vmatprep.mubr.msk.f32.mxu0 %vm546_vm2, %v545_v4  ;;  %520 = vset.pattern.permute.xlu0 %v547_v17  ;;  %vm334_vm3 = vcmask 130048   ;;  %s548_s23 = smov [#allocation3]  }
  0x12   :  { %v498_v44 = vpack.c.bf16 %v238_v42, %v237_v41  ;;  %v221_v45 = vld [vmem:[%s766_s5 + $0x40] sm:$0xff]  ;;  %v222_v46 = vld [vmem:[%s766_s5 + $0x48] sm:$0xff]  ;;  %v240_v48 = vld [vmem:[%s766_s5 + $0xd8] sm:$0xff]  ;;  %v200_v3 = vshrl.u32 %v199_v2, 7  ;;  %s418_s24 = sshll.u32 %s548_s23, 4  ;;  %s419_s24 = int_to_ptr.vmem [resolvable:$true] %s418_s24 }
  0x13   :  { %493 = vmatpush3.bf16.msra.mxu1 %v492_v37  ;;  %v500_v49 = vpack.c.bf16 %v222_v46, %v221_v45  ;;  %v502_v50 = vpack.c.bf16 %v240_v48, %v239_v47  ;;  %v223_v51 = vld [vmem:[%s766_s5 + $0x50] sm:$0xff]  ;;  %v224_v52 = vld [vmem:[%s766_s5 + $0x58] sm:$0xff]  ;;  %v241_v53 = vld [vmem:[%s766_s5 + $0xe0] sm:$0xff]  ;;  %p526_p1 = scmp.lt.s32.totalorder %s419_s24, %s419_s24 }
  0x14   :  { %495 = vmatprep.subr.bf16.mxu1 %v494_v38  ;;  %v242_v54 = vld [vmem:[%s766_s5 + $0xe8] sm:$0xff]  ;;  %v504_v55 = vpack.c.bf16 %v224_v52, %v223_v51  ;;  %v225_v57 = vld [vmem:[%s766_s5 + $0x60] sm:$0xff]  ;;  %v243_v60 = vld [vmem:[%s766_s5 + $0xf0] sm:$0xff]  ;;  %v201_v5 = vsub.s32 0, %v200_v3  ;;  %v205_v7 = vsub.s32 1, %v200_v3 }
  0x15   :  { %v506_v56 = vpack.c.bf16 %v242_v54, %v241_v53  ;;  %v226_v58 = vld [vmem:[%s766_s5 + $0x68] sm:$0xff]  ;;  %v244_v61 = vld [vmem:[%s766_s5 + $0xf8] sm:$0xff]  ;;  %v227_v63 = vld [vmem:[%s766_s5 + $0x70] sm:$0xff] }
  0x16   :  { %v508_v59 = vpack.c.bf16 %v226_v58, %v225_v57  ;;  %v510_v62 = vpack.c.bf16 %v244_v61, %v243_v60  ;;  %v228_v0 = vld [vmem:[%s766_s5 + $0x78] sm:$0xff]  ;;  %v197_v6 = vld [vmem:[%s765_s4] sm:$0x3] }
  0x17   :  { %497 = vmatpush3.bf16.msra.mxu1 %v496_v43  ;;  %v512_v1 = vpack.c.bf16 %v228_v0, %v227_v63  ;;  %v202_v8 = vrot.slane %v197_v6, %v201_v5  ;;  %v206_v9 = vrot.slane %v197_v6, %v205_v7  ;;  %v429_v16 = vld [vmem:[#allocation2] ss:$0 sm:$0xff] }
  0x18   :  { %499 = vmatprep.subr.bf16.mxu1 %v498_v44  ;;  %331 = vperm.xlu0 %520, %v429_v16   ;;  %v428_v19 = vld [vmem:[%s767_s6] ss:$0 sm:$0xff]  ;;  %s521_s6 = scalar_lea.vmem %s419_s24, 128 }
  0x19   :  { %v323_v24 = vld [vmem:[%s768_s7] sm:$0xff]  ;;  %p522_p0 = scmp.ne.s32.totalorder %s419_s24, %s521_s6  ;;  %p527_p2 = scmp.lt.s32.totalorder %s521_s6, %s521_s6 }
  0x1b   :  { %501 = vmatpush3.bf16.msra.mxu1 %v500_v49  ;;  %p528_p3 = por %p527_p2, %p526_p1 }
  0x1c   :  { %503 = vmatprep.subr.bf16.mxu1 %v502_v50 }
  0x1d   :  { %p529_p4 = pnand %p528_p3, %p522_p0 }
  0x1f   :  { %505 = vmatpush3.bf16.msra.mxu1 %v504_v55 }
  0x20   :  { %507 = vmatprep.subr.bf16.mxu1 %v506_v56 }
  0x23   :  { %509 = vmatpush3.bf16.msra.mxu1 %v508_v59 }
  0x24   :  { %511 = vmatprep.subr.bf16.mxu1 %v510_v62 }
  0x27   :  { %513 = vmatpush3.bf16.msra.mxu1 %v512_v1 }
  0x97   :  { %v332_v4 = vpop.permute.xlu0 %331 }
  0xe2   :  { %v192_v10 = vpop.f32.mrb[0].mxu0 }
  0xe3   :  { %v209_v11 = vadd.f32 %v202_v8, %v192_v10  ;;  %v194_v12 = vpop.f32.mrb[1].mxu0 }
  0xe4   :  { %v210_v13 = vadd.f32 %v206_v9, %v194_v12 }
  0xe5   :  { %v211_v15 = vmax.f32 %v209_v11, 0.0 }
  0xe6   :  { %v212_v14 = vmax.f32 %v210_v13, 0.0 }
  0xe8   :  { %316 = vmatprep.mubr.f32.mxu1 %v212_v14 }
  0xe9   :  { %317 = vmatmul.mubr.f32.vlgmr.msra.gmra.mrb[0].mxu1 %v211_v15 }
 0x1bc   :  { %v464_v18 = vpop.f32.mrb[0].mxu1 }
 0x1bd   :  { %v465_v20 = vpop.f32.mrb[1].mxu1 }
 0x1be   :  { %v466_v21 = vadd.f32 %v465_v20, %v464_v18 }
 0x1c0   :  { %v319_v22 = vadd.f32 %v466_v21, %v428_v19 }
 0x1c2   :  { %v322_v23 = vmax.f32 %v319_v22, 0.0 }
 0x1c4   :  { %470 = vmatpush3.xpose.msk.msra.mxu0 %vm334_vm3, %v322_v23 }
 0x1c7   :  { %472 = vmatmul.mubr.msk.f32.vlgmr.msra.gmra.mrb[2].mxu0 %vm334_vm3, %v323_v24 }
 0x29a   :  { %v407_v25 = vpop.f32.mrb[2].mxu0 }
 0x29b   :  { %v408_v26 = vadd.f32 %v407_v25, %v332_v4  ;;  %v473_v27 = vpop.f32.mrb[3].mxu0 }
 0x29d   :  { %411 = vst.msk [vmem:[#allocation3] sm:$0xff] %vm47_vm0, %v408_v26 }
 0x29e   :  { %532 = shalt.err (!%p529_p4)
}
 0x29f   :  { %s533_s7 = scalar_lea.hbm %s770_s9, 128 }
 0x2a0   :  { %p534_p5 = scmp.ne.s32.totalorder %s770_s9, %s533_s7  ;;  %p537_p6 = scmp.lt.u32.totalorder %s533_s7, %s770_s9 }
 0x2a2   :  { %p539_p7 = pnand %p537_p6, %p534_p5 }
 0x2a4   :  { %542 = shalt.err (!%p539_p7)
}
 0x2a5   :  { %421 = dma.vmem_to_hbm [thread:$0]  %s419_s24, 128, %s770_s9, [#allocation4]  }
 0x2a6   :  { %543 = dma.done.wait [#allocation4], 128  }
 0x2a7   :  { %544 = vsyncadd [#allocation4], 4294967168 }
 0x2a8   :  { %425 = vsyncpa [#allocation4], 1 }

</bundles_post_ra>
